<compile_context>
chip_gen: v7x
topology: tpu7x:2x2x1
jax: 0.10.0
libtpu: 0.0.40
codegen_flags: <defaults>
</compile_context>

<pallas_src>
import functools

import jax
import jax.numpy as jnp
from jax.experimental import pallas as pl
from jax.experimental.pallas import tpu as pltpu

EPS = 1e-12          # F.normalize default eps
NEG_SLOPE = 0.2      # leaky_relu(p=0.2)
LANE = 128
SUBLANE = 8


def _round_up(n, m):
    return ((n + m - 1) // m) * m


def _vmem_capacity_bytes():
    # Chip-aware VMEM capacity (64 MiB/TC on v7x, 128 MiB on v5e/v6e).
    try:
        return int(pltpu.get_tpu_info().vmem_capacity_bytes)
    except Exception:
        return 64 * 1024 * 1024  # conservative fallback (v7x)


# --------------------------------------------------------------------------- #
# Kernels
# --------------------------------------------------------------------------- #
def style_vectorizer_resident_kernel(x_ref, w_ref, b_ref, o_ref, *, depth):
    """Whole MLP for one batch tile; all layer weights resident in VMEM.

    x_ref : (TB, emb_p)            input tile
    w_ref : (depth, emb_p, emb_p)  bf16 weights, (in, out) layout, lr_mul folded
    b_ref : (depth, 1, emb_p)      f32 biases, lr_mul folded
    o_ref : (TB, emb_p)            output tile
    """
    x = x_ref[...].astype(jnp.float32)

    # F.normalize(x, dim=1): x / max(||x||, eps) == x * rsqrt(max(||x||^2, eps^2))
    # rsqrt goes to the EUP (otherwise idle) instead of sqrt + divide on the VALU.
    ssq = jnp.sum(x * x, axis=1, keepdims=True)
    h = x * jax.lax.rsqrt(jnp.maximum(ssq, EPS * EPS))

    # Unrolled EqualLinear + LeakyReLU stack: bf16 MXU operands, f32 accumulate,
    # f32 elementwise (v5e has no bf16 VPU/EUP).
    for i in range(depth):
        h = jnp.dot(h.astype(jnp.bfloat16), w_ref[i],
                    preferred_element_type=jnp.float32) + b_ref[i].astype(jnp.float32)
        h = jnp.maximum(h, NEG_SLOPE * h)   # LeakyReLU(0.2), single vmax

    o_ref[...] = h.astype(o_ref.dtype)


def style_vectorizer_stream_kernel(x_ref, w_ref, b_ref, o_ref, h_ref):
    """Weight-streaming path: grid = (batch_tiles, depth); one layer per step.

    x_ref : (TB, emb_p)         input tile (used at d == 0)
    w_ref : (1, emb_p, emb_p)   this layer's bf16 weights
    b_ref : (1, 1, emb_p)       this layer's f32 bias
    o_ref : (TB, emb_p)         output tile (written at last d)
    h_ref : (TB, emb_p) f32     activation carried across depth steps
    """
    d = pl.program_id(1)

    @pl.when(d == 0)
    def _():
        x = x_ref[...].astype(jnp.float32)
        ssq = jnp.sum(x * x, axis=1, keepdims=True)
        h_ref[...] = x * jax.lax.rsqrt(jnp.maximum(ssq, EPS * EPS))

    h = jnp.dot(h_ref[...].astype(jnp.bfloat16), w_ref[0],
                preferred_element_type=jnp.float32) + b_ref[0].astype(jnp.float32)
    h_ref[...] = jnp.maximum(h, NEG_SLOPE * h)

    @pl.when(d == pl.num_programs(1) - 1)
    def _():
        o_ref[...] = h_ref[...].astype(o_ref.dtype)


# --------------------------------------------------------------------------- #
# Wrapper
# --------------------------------------------------------------------------- #
def prepare_style_params(weights, biases, lr_mul=0.1):
    """One-time parameter transform: fold lr_mul, transpose (out,in)->(in,out),
    zero-pad emb to a lane multiple, cast weights to bf16.

    Call this once at init (parameters are static) instead of per forward call.
    """
    depth, emb_out, emb_in = weights.shape
    assert emb_in == emb_out
    emb = emb_in
    emb_p = _round_up(emb, LANE)

    w_t = jnp.transpose(weights * lr_mul, (0, 2, 1)).astype(jnp.bfloat16)  # (d,in,out)
    b_s = (biases * lr_mul).astype(jnp.float32)
    if emb_p == emb:
        w_pad = w_t
        b_pad = b_s.reshape(depth, 1, emb)
    else:
        # Zero pad keeps padded lanes exactly zero through matmul + bias + leaky.
        w_pad = jnp.zeros((depth, emb_p, emb_p), jnp.bfloat16).at[:, :emb, :emb].set(w_t)
        b_pad = jnp.zeros((depth, 1, emb_p), jnp.float32).at[:, 0, :emb].set(b_s)
    return w_pad, b_pad


def style_vectorizer(x, weights=None, biases=None, lr_mul=0.1, *,
                     prepared_params=None, block_b=512, force_stream=False):
    """x: (B, emb). Either pass raw (weights (depth,out,in), biases (depth,emb))
    or a pre-built `prepared_params = prepare_style_params(...)` (preferred)."""
    B, emb = x.shape
    if prepared_params is None:
        prepared_params = prepare_style_params(weights, biases, lr_mul)
    w_pad, b_pad = prepared_params
    depth, emb_p, _ = w_pad.shape
    assert emb <= emb_p

    xdt = jnp.dtype(x.dtype).itemsize
    cap = _vmem_capacity_bytes()

    # Resident weights or per-layer streaming, depending on what fits VMEM.
    param_bytes = depth * emb_p * emb_p * 2 + depth * emb_p * 4
    use_stream = force_stream or (param_bytes > int(0.45 * cap))

    # Batch tile: sublane-padded; keep >= 2 grid steps when B allows so the
    # "parallel" axis can shard across v7x's 2 TensorCores.
    b_r = _round_up(B, SUBLANE)
    tb = min(b_r, block_b, max(SUBLANE, _round_up(b_r // 2, SUBLANE)))

    # Cap tb from the actual VMEM budget (activations + params must fit).
    resident_param_vmem = (2 * (emb_p * emb_p * 2 + emb_p * 4) if use_stream
                           else param_bytes)
    per_row_bytes = emb_p * (4 * xdt + 6 * 4)     # x/out double-buffered + f32 work
    avail = int(0.85 * cap) - resident_param_vmem
    tb_cap = max(SUBLANE, (avail // max(per_row_bytes, 1)) // SUBLANE * SUBLANE)
    tb = max(SUBLANE, min(tb, tb_cap))

    b_p = _round_up(B, tb)
    aligned = (b_p == B and emb_p == emb)
    x_pad = x if aligned else jnp.zeros((b_p, emb_p), x.dtype).at[:B, :emb].set(x)

    vmem_needed = (resident_param_vmem
                   + 2 * 2 * tb * emb_p * xdt        # x / out tiles, double-buffered
                   + 6 * tb * emb_p * 4              # f32 activation headroom
                   + (tb * emb_p * 4 if use_stream else 0))
    vmem_limit = int(min(max(2 * vmem_needed, 32 * 1024 * 1024), int(0.9 * cap)))

    cost = pl.CostEstimate(
        flops=2 * depth * b_p * emb_p * emb_p,
        transcendentals=b_p,
        bytes_accessed=(depth * emb_p * emb_p * 2
                        + depth * emb_p * 4
                        + 2 * b_p * emb_p * xdt),
    )
    out_shape = jax.ShapeDtypeStruct((b_p, emb_p), x.dtype)

    if use_stream:
        out = pl.pallas_call(
            style_vectorizer_stream_kernel,
            out_shape=out_shape,
            grid=(b_p // tb, depth),
            in_specs=[
                pl.BlockSpec((tb, emb_p), lambda i, d: (i, 0)),
                pl.BlockSpec((1, emb_p, emb_p), lambda i, d: (d, 0, 0)),
                pl.BlockSpec((1, 1, emb_p), lambda i, d: (d, 0, 0)),
            ],
            out_specs=pl.BlockSpec((tb, emb_p), lambda i, d: (i, 0)),
            scratch_shapes=[pltpu.VMEM((tb, emb_p), jnp.float32)],
            compiler_params=pltpu.CompilerParams(
                dimension_semantics=("parallel", "arbitrary"),
                vmem_limit_bytes=vmem_limit),
            cost_estimate=cost,
        )(x_pad, w_pad, b_pad)
    else:
        kernel = functools.partial(style_vectorizer_resident_kernel, depth=depth)

        def _call(single_buffer_params):
            # Constant index_map -> params stay VMEM-resident; Buffered(1) drops
            # the never-used second buffer (halves resident parameter VMEM).
            pm = ({"pipeline_mode": pl.Buffered(1)} if single_buffer_params else {})
            return pl.pallas_call(
                kernel,
                out_shape=out_shape,
                grid=(b_p // tb,),
                in_specs=[
                    pl.BlockSpec((tb, emb_p), lambda i: (i, 0)),
                    pl.BlockSpec((depth, emb_p, emb_p), lambda i: (0, 0, 0), **pm),
                    pl.BlockSpec((depth, 1, emb_p), lambda i: (0, 0, 0), **pm),
                ],
                out_specs=pl.BlockSpec((tb, emb_p), lambda i: (i, 0)),
                compiler_params=pltpu.CompilerParams(
                    dimension_semantics=("parallel",),
                    vmem_limit_bytes=vmem_limit),
                cost_estimate=cost,
            )(x_pad, w_pad, b_pad)

        try:
            out = _call(True)
        except Exception:
            # pipeline_mode=Buffered(1) unsupported on this jax/backend combo:
            # fall back to default double-buffered params (correctness identical).
            out = _call(False)

    return out if aligned else out[:B, :emb]


def style_vectorizer_ref(x, weights, biases, lr_mul=0.1, matmul_dtype=jnp.float32):
    """Pure-JAX reference mirroring the PyTorch module.

    matmul_dtype=jnp.bfloat16 mirrors the kernel's numerics (bf16 MXU operands,
    f32 accumulation / elementwise); jnp.float32 is exact PyTorch-f32 semantics.
    """
    x = x.astype(jnp.float32)
    norm = jnp.sqrt(jnp.sum(x * x, axis=1, keepdims=True))
    h = x / jnp.maximum(norm, EPS)
    for i in range(weights.shape[0]):
        w = (weights[i] * lr_mul).T.astype(matmul_dtype)
        b = (biases[i] * lr_mul).astype(jnp.float32)
        h = jnp.dot(h.astype(matmul_dtype), w,
                    preferred_element_type=jnp.float32) + b
        h = jnp.where(h > 0, h, NEG_SLOPE * h)
    return h


if __name__ == "__main__":
    B, EMB, DEPTH, LR_MUL = 8, 32, 3, 0.1

    key = jax.random.PRNGKey(0)
    kx, kw = jax.random.split(key)

    x = jax.random.normal(kx, (B, EMB), dtype=jnp.float32)
    # Deterministic parameter init matching the module's __init__:
    #   weight ~ randn(out_dim, in_dim), bias = zeros(out_dim)
    weights = jax.random.normal(kw, (DEPTH, EMB, EMB), dtype=jnp.float32)
    biases = jnp.zeros((DEPTH, EMB), dtype=jnp.float32)

    # Hoisted one-time parameter transform (done once at "init").
    prepared = prepare_style_params(weights, biases, LR_MUL)

    # Default (resident-weights) path.
    out = jax.block_until_ready(
        style_vectorizer(x, lr_mul=LR_MUL, prepared_params=prepared))
    assert out.shape == (B, EMB)

    # Exercise the weight-streaming fallback path as well (v7x large-model path).
    out_stream = jax.block_until_ready(
        style_vectorizer(x, lr_mul=LR_MUL, prepared_params=prepared,
                         force_stream=True))
    assert out_stream.shape == (B, EMB)

    # Tight check against a reference that mirrors the kernel's bf16-operand /
    # f32-accumulate numerics.
    ref_bf16 = style_vectorizer_ref(x, weights, biases, lr_mul=LR_MUL,
                                    matmul_dtype=jnp.bfloat16)
    assert jnp.allclose(out, ref_bf16, atol=1e-4, rtol=1e-4)
    assert jnp.allclose(out_stream, ref_bf16, atol=1e-4, rtol=1e-4)

    # Looser check against the exact f32 PyTorch-semantics reference
    # (difference bounded by bf16 operand quantization; accumulation is f32).
    ref_f32 = style_vectorizer_ref(x, weights, biases, lr_mul=LR_MUL,
                                   matmul_dtype=jnp.float32)
    assert jnp.allclose(out, ref_f32, atol=5e-3, rtol=5e-2)

    print("KERNEL_OK")
</pallas_src>

<mosaic_0001>
module attributes {stable_mosaic.version = 11 : i64} {
  func.func @style_vectorizer_resident_kernel(%arg0: i32, %arg1: memref<8x128xf32, #tpu.memory_space<vmem>>, %arg2: memref<3x128x128xbf16, #tpu.memory_space<vmem>>, %arg3: memref<3x1x128xf32, #tpu.memory_space<vmem>>, %arg4: memref<8x128xf32, #tpu.memory_space<vmem>>) attributes {dimension_semantics = [#tpu.dimension_semantics<parallel>], iteration_bounds = array<i64: 1>, scalar_prefetch = 0 : i64, scratch_operands = 0 : i64, tpu.core_type = #tpu.core_type<tc>, window_params = [{transform_indices = @transform_0, window_bounds = array<i64: 8, 128>}, {pipeline_mode = #tpu.pipeline_mode<synchronous>, transform_indices = @transform_1, window_bounds = array<i64: 3, 128, 128>}, {pipeline_mode = #tpu.pipeline_mode<synchronous>, transform_indices = @transform_2, window_bounds = array<i64: 3, 1, 128>}, {transform_indices = @transform_3, window_bounds = array<i64: 8, 128>}]} {
    %c0 = arith.constant 0 : index
    %c0_0 = arith.constant 0 : index
    %0 = vector.load %arg1[%c0, %c0_0] : memref<8x128xf32, #tpu.memory_space<vmem>>, vector<8x128xf32>
    %1 = arith.mulf %0, %0 : vector<8x128xf32>
    %cst = arith.constant dense<0.000000e+00> : vector<8xf32>
    %2 = vector.multi_reduction <add>, %1, %cst [1] : vector<8x128xf32> to vector<8xf32>
    %3 = vector.shape_cast %2 : vector<8xf32> to vector<8x1xf32>
    %cst_1 = arith.constant 1.000000e-24 : f32
    %4 = vector.broadcast %cst_1 : f32 to vector<8x1xf32>
    %5 = arith.maximumf %3, %4 : vector<8x1xf32>
    %6 = math.rsqrt %5 : vector<8x1xf32>
    %7 = vector.broadcast %6 : vector<8x1xf32> to vector<8x128xf32>
    %8 = arith.mulf %0, %7 : vector<8x128xf32>
    %9 = arith.truncf %8 : vector<8x128xf32> to vector<8x128xbf16>
    %c0_2 = arith.constant 0 : index
    %c0_3 = arith.constant 0 : index
    %c0_4 = arith.constant 0 : index
    %10 = vector.load %arg2[%c0_2, %c0_3, %c0_4] : memref<3x128x128xbf16, #tpu.memory_space<vmem>>, vector<1x128x128xbf16>
    %11 = vector.shape_cast %10 : vector<1x128x128xbf16> to vector<128x128xbf16>
    %cst_5 = arith.constant dense<0.000000e+00> : vector<8x128xf32>
    %12 = tpu.matmul %9, %11, %cst_5 {dimension_numbers = #tpu.dot_dimension_numbers<[1], [0], [0], [1], [0, 0, 1, 1], [], []>} : vector<8x128xbf16>, vector<128x128xbf16>, vector<8x128xf32> -> vector<8x128xf32>
    %c0_6 = arith.constant 0 : index
    %c0_7 = arith.constant 0 : index
    %c0_8 = arith.constant 0 : index
    %13 = vector.load %arg3[%c0_6, %c0_7, %c0_8] : memref<3x1x128xf32, #tpu.memory_space<vmem>>, vector<1x1x128xf32>
    %14 = vector.shape_cast %13 : vector<1x1x128xf32> to vector<1x128xf32>
    %15 = vector.broadcast %14 : vector<1x128xf32> to vector<8x128xf32>
    %16 = arith.addf %12, %15 : vector<8x128xf32>
    %cst_9 = arith.constant 2.000000e-01 : f32
    %17 = vector.broadcast %cst_9 : f32 to vector<8x128xf32>
    %18 = arith.mulf %17, %16 : vector<8x128xf32>
    %19 = arith.maximumf %16, %18 : vector<8x128xf32>
    %20 = arith.truncf %19 : vector<8x128xf32> to vector<8x128xbf16>
    %c1 = arith.constant 1 : index
    %c0_10 = arith.constant 0 : index
    %c0_11 = arith.constant 0 : index
    %21 = vector.load %arg2[%c1, %c0_10, %c0_11] : memref<3x128x128xbf16, #tpu.memory_space<vmem>>, vector<1x128x128xbf16>
    %22 = vector.shape_cast %21 : vector<1x128x128xbf16> to vector<128x128xbf16>
    %cst_12 = arith.constant dense<0.000000e+00> : vector<8x128xf32>
    %23 = tpu.matmul %20, %22, %cst_12 {dimension_numbers = #tpu.dot_dimension_numbers<[1], [0], [0], [1], [0, 0, 1, 1], [], []>} : vector<8x128xbf16>, vector<128x128xbf16>, vector<8x128xf32> -> vector<8x128xf32>
    %c1_13 = arith.constant 1 : index
    %c0_14 = arith.constant 0 : index
    %c0_15 = arith.constant 0 : index
    %24 = vector.load %arg3[%c1_13, %c0_14, %c0_15] : memref<3x1x128xf32, #tpu.memory_space<vmem>>, vector<1x1x128xf32>
    %25 = vector.shape_cast %24 : vector<1x1x128xf32> to vector<1x128xf32>
    %26 = vector.broadcast %25 : vector<1x128xf32> to vector<8x128xf32>
    %27 = arith.addf %23, %26 : vector<8x128xf32>
    %cst_16 = arith.constant 2.000000e-01 : f32
    %28 = vector.broadcast %cst_16 : f32 to vector<8x128xf32>
    %29 = arith.mulf %28, %27 : vector<8x128xf32>
    %30 = arith.maximumf %27, %29 : vector<8x128xf32>
    %31 = arith.truncf %30 : vector<8x128xf32> to vector<8x128xbf16>
    %c2 = arith.constant 2 : index
    %c0_17 = arith.constant 0 : index
    %c0_18 = arith.constant 0 : index
    %32 = vector.load %arg2[%c2, %c0_17, %c0_18] : memref<3x128x128xbf16, #tpu.memory_space<vmem>>, vector<1x128x128xbf16>
    %33 = vector.shape_cast %32 : vector<1x128x128xbf16> to vector<128x128xbf16>
    %cst_19 = arith.constant dense<0.000000e+00> : vector<8x128xf32>
    %34 = tpu.matmul %31, %33, %cst_19 {dimension_numbers = #tpu.dot_dimension_numbers<[1], [0], [0], [1], [0, 0, 1, 1], [], []>} : vector<8x128xbf16>, vector<128x128xbf16>, vector<8x128xf32> -> vector<8x128xf32>
    %c2_20 = arith.constant 2 : index
    %c0_21 = arith.constant 0 : index
    %c0_22 = arith.constant 0 : index
    %35 = vector.load %arg3[%c2_20, %c0_21, %c0_22] : memref<3x1x128xf32, #tpu.memory_space<vmem>>, vector<1x1x128xf32>
    %36 = vector.shape_cast %35 : vector<1x1x128xf32> to vector<1x128xf32>
    %37 = vector.broadcast %36 : vector<1x128xf32> to vector<8x128xf32>
    %38 = arith.addf %34, %37 : vector<8x128xf32>
    %cst_23 = arith.constant 2.000000e-01 : f32
    %39 = vector.broadcast %cst_23 : f32 to vector<8x128xf32>
    %40 = arith.mulf %39, %38 : vector<8x128xf32>
    %41 = arith.maximumf %38, %40 : vector<8x128xf32>
    %c0_24 = arith.constant 0 : index
    %c0_25 = arith.constant 0 : index
    %42 = vector.load %arg4[%c0_24, %c0_25] : memref<8x128xf32, #tpu.memory_space<vmem>>, vector<8x128xf32>
    tpu.vector_store %arg4[%c0_24, %c0_25], %41 {strides = array<i32>} : memref<8x128xf32, #tpu.memory_space<vmem>>, vector<8x128xf32>,
    return
  }
  func.func @transform_0(%arg0: i32) -> (i32, i32) {
    %c0_i32 = arith.constant 0 : i32
    %c0_i32_0 = arith.constant 0 : i32
    return %arg0, %c0_i32 : i32, i32
  }
  func.func @transform_1(%arg0: i32) -> (i32, i32, i32) {
    %c0_i32 = arith.constant 0 : i32
    %c0_i32_0 = arith.constant 0 : i32
    %c0_i32_1 = arith.constant 0 : i32
    %c0_i32_2 = arith.constant 0 : i32
    return %c0_i32, %c0_i32_0, %c0_i32_1 : i32, i32, i32
  }
  func.func @transform_2(%arg0: i32) -> (i32, i32, i32) {
    %c0_i32 = arith.constant 0 : i32
    %c0_i32_0 = arith.constant 0 : i32
    %c0_i32_1 = arith.constant 0 : i32
    %c0_i32_2 = arith.constant 0 : i32
    return %c0_i32, %c0_i32_0, %c0_i32_1 : i32, i32, i32
  }
  func.func @transform_3(%arg0: i32) -> (i32, i32) {
    %c0_i32 = arith.constant 0 : i32
    %c0_i32_0 = arith.constant 0 : i32
    return %arg0, %c0_i32 : i32, i32
  }
}

module attributes {stable_mosaic.version = 11 : i64} {
  func.func @style_vectorizer_resident_kernel(%arg0: i32, %arg1: memref<8x128xf32, #tpu.memory_space<vmem>>, %arg2: memref<3x128x128xbf16, #tpu.memory_space<vmem>>, %arg3: memref<3x1x128xf32, #tpu.memory_space<vmem>>, %arg4: memref<8x128xf32, #tpu.memory_space<vmem>>) attributes {dimension_semantics = [#tpu.dimension_semantics<parallel>], iteration_bounds = array<i64: 1>, scalar_prefetch = 0 : i64, scratch_operands = 0 : i64, tpu.core_type = #tpu.core_type<tc>, window_params = [{transform_indices = @transform_0, window_bounds = array<i64: 8, 128>}, {pipeline_mode = #tpu.pipeline_mode<synchronous>, transform_indices = @transform_1, window_bounds = array<i64: 3, 128, 128>}, {pipeline_mode = #tpu.pipeline_mode<synchronous>, transform_indices = @transform_2, window_bounds = array<i64: 3, 1, 128>}, {transform_indices = @transform_3, window_bounds = array<i64: 8, 128>}]} {
    %c0 = arith.constant 0 : index
    %c0_0 = arith.constant 0 : index
    %0 = vector.load %arg1[%c0, %c0_0] : memref<8x128xf32, #tpu.memory_space<vmem>>, vector<8x128xf32>
    %1 = arith.mulf %0, %0 : vector<8x128xf32>
    %cst = arith.constant dense<0.000000e+00> : vector<8xf32>
    %2 = vector.multi_reduction <add>, %1, %cst [1] : vector<8x128xf32> to vector<8xf32>
    %3 = vector.shape_cast %2 : vector<8xf32> to vector<8x1xf32>
    %cst_1 = arith.constant 1.000000e-24 : f32
    %4 = vector.broadcast %cst_1 : f32 to vector<8x1xf32>
    %5 = arith.maximumf %3, %4 : vector<8x1xf32>
    %6 = math.rsqrt %5 : vector<8x1xf32>
    %7 = vector.broadcast %6 : vector<8x1xf32> to vector<8x128xf32>
    %8 = arith.mulf %0, %7 : vector<8x128xf32>
    %9 = arith.truncf %8 : vector<8x128xf32> to vector<8x128xbf16>
    %c0_2 = arith.constant 0 : index
    %c0_3 = arith.constant 0 : index
    %c0_4 = arith.constant 0 : index
    %10 = vector.load %arg2[%c0_2, %c0_3, %c0_4] : memref<3x128x128xbf16, #tpu.memory_space<vmem>>, vector<1x128x128xbf16>
    %11 = vector.shape_cast %10 : vector<1x128x128xbf16> to vector<128x128xbf16>
    %cst_5 = arith.constant dense<0.000000e+00> : vector<8x128xf32>
    %12 = tpu.matmul %9, %11, %cst_5 {dimension_numbers = #tpu.dot_dimension_numbers<[1], [0], [0], [1], [0, 0, 1, 1], [], []>} : vector<8x128xbf16>, vector<128x128xbf16>, vector<8x128xf32> -> vector<8x128xf32>
    %c0_6 = arith.constant 0 : index
    %c0_7 = arith.constant 0 : index
    %c0_8 = arith.constant 0 : index
    %13 = vector.load %arg3[%c0_6, %c0_7, %c0_8] : memref<3x1x128xf32, #tpu.memory_space<vmem>>, vector<1x1x128xf32>
    %14 = vector.shape_cast %13 : vector<1x1x128xf32> to vector<1x128xf32>
    %15 = vector.broadcast %14 : vector<1x128xf32> to vector<8x128xf32>
    %16 = arith.addf %12, %15 : vector<8x128xf32>
    %cst_9 = arith.constant 2.000000e-01 : f32
    %17 = vector.broadcast %cst_9 : f32 to vector<8x128xf32>
    %18 = arith.mulf %17, %16 : vector<8x128xf32>
    %19 = arith.maximumf %16, %18 : vector<8x128xf32>
    %20 = arith.truncf %19 : vector<8x128xf32> to vector<8x128xbf16>
    %c1 = arith.constant 1 : index
    %c0_10 = arith.constant 0 : index
    %c0_11 = arith.constant 0 : index
    %21 = vector.load %arg2[%c1, %c0_10, %c0_11] : memref<3x128x128xbf16, #tpu.memory_space<vmem>>, vector<1x128x128xbf16>
    %22 = vector.shape_cast %21 : vector<1x128x128xbf16> to vector<128x128xbf16>
    %cst_12 = arith.constant dense<0.000000e+00> : vector<8x128xf32>
    %23 = tpu.matmul %20, %22, %cst_12 {dimension_numbers = #tpu.dot_dimension_numbers<[1], [0], [0], [1], [0, 0, 1, 1], [], []>} : vector<8x128xbf16>, vector<128x128xbf16>, vector<8x128xf32> -> vector<8x128xf32>
    %c1_13 = arith.constant 1 : index
    %c0_14 = arith.constant 0 : index
    %c0_15 = arith.constant 0 : index
    %24 = vector.load %arg3[%c1_13, %c0_14, %c0_15] : memref<3x1x128xf32, #tpu.memory_space<vmem>>, vector<1x1x128xf32>
    %25 = vector.shape_cast %24 : vector<1x1x128xf32> to vector<1x128xf32>
    %26 = vector.broadcast %25 : vector<1x128xf32> to vector<8x128xf32>
    %27 = arith.addf %23, %26 : vector<8x128xf32>
    %cst_16 = arith.constant 2.000000e-01 : f32
    %28 = vector.broadcast %cst_16 : f32 to vector<8x128xf32>
    %29 = arith.mulf %28, %27 : vector<8x128xf32>
    %30 = arith.maximumf %27, %29 : vector<8x128xf32>
    %31 = arith.truncf %30 : vector<8x128xf32> to vector<8x128xbf16>
    %c2 = arith.constant 2 : index
    %c0_17 = arith.constant 0 : index
    %c0_18 = arith.constant 0 : index
    %32 = vector.load %arg2[%c2, %c0_17, %c0_18] : memref<3x128x128xbf16, #tpu.memory_space<vmem>>, vector<1x128x128xbf16>
    %33 = vector.shape_cast %32 : vector<1x128x128xbf16> to vector<128x128xbf16>
    %cst_19 = arith.constant dense<0.000000e+00> : vector<8x128xf32>
    %34 = tpu.matmul %31, %33, %cst_19 {dimension_numbers = #tpu.dot_dimension_numbers<[1], [0], [0], [1], [0, 0, 1, 1], [], []>} : vector<8x128xbf16>, vector<128x128xbf16>, vector<8x128xf32> -> vector<8x128xf32>
    %c2_20 = arith.constant 2 : index
    %c0_21 = arith.constant 0 : index
    %c0_22 = arith.constant 0 : index
    %35 = vector.load %arg3[%c2_20, %c0_21, %c0_22] : memref<3x1x128xf32, #tpu.memory_space<vmem>>, vector<1x1x128xf32>
    %36 = vector.shape_cast %35 : vector<1x1x128xf32> to vector<1x128xf32>
    %37 = vector.broadcast %36 : vector<1x128xf32> to vector<8x128xf32>
    %38 = arith.addf %34, %37 : vector<8x128xf32>
    %cst_23 = arith.constant 2.000000e-01 : f32
    %39 = vector.broadcast %cst_23 : f32 to vector<8x128xf32>
    %40 = arith.mulf %39, %38 : vector<8x128xf32>
    %41 = arith.maximumf %38, %40 : vector<8x128xf32>
    %c0_24 = arith.constant 0 : index
    %c0_25 = arith.constant 0 : index
    %42 = vector.load %arg4[%c0_24, %c0_25] : memref<8x128xf32, #tpu.memory_space<vmem>>, vector<8x128xf32>
    tpu.vector_store %arg4[%c0_24, %c0_25], %41 {strides = array<i32>} : memref<8x128xf32, #tpu.memory_space<vmem>>, vector<8x128xf32>,
    return
  }
  func.func @transform_0(%arg0: i32) -> (i32, i32) {
    %c0_i32 = arith.constant 0 : i32
    %c0_i32_0 = arith.constant 0 : i32
    return %arg0, %c0_i32 : i32, i32
  }
  func.func @transform_1(%arg0: i32) -> (i32, i32, i32) {
    %c0_i32 = arith.constant 0 : i32
    %c0_i32_0 = arith.constant 0 : i32
    %c0_i32_1 = arith.constant 0 : i32
    %c0_i32_2 = arith.constant 0 : i32
    return %c0_i32, %c0_i32_0, %c0_i32_1 : i32, i32, i32
  }
  func.func @transform_2(%arg0: i32) -> (i32, i32, i32) {
    %c0_i32 = arith.constant 0 : i32
    %c0_i32_0 = arith.constant 0 : i32
    %c0_i32_1 = arith.constant 0 : i32
    %c0_i32_2 = arith.constant 0 : i32
    return %c0_i32, %c0_i32_0, %c0_i32_1 : i32, i32, i32
  }
  func.func @transform_3(%arg0: i32) -> (i32, i32) {
    %c0_i32 = arith.constant 0 : i32
    %c0_i32_0 = arith.constant 0 : i32
    return %arg0, %c0_i32 : i32, i32
  }
}

</mosaic_0001>

<bundles_post_ra>
// kernel: tpu_custom_call.1
= control target key start
LH: loop header
LB: loop body
LE: loop exit
PB: predicated region body
PF: predicated region fallthrough
CT: control target
= control target key end

     0   :  { %8 = vsyncpa [#allocation3], 0  ;;  %s742_s0 = inlined_call_operand.hbm [shape: f32[8,128], index: 0, kind: input, shape index: {}]   ;;  %s743_s1 = inlined_call_operand.hbm [shape: bf16[3,128,128], index: 1, kind: input, shape index: {}]   ;;  %s744_s2 = inlined_call_operand.vmem [shape: f32[3,1,128], index: 2, kind: input, shape index: {}]   ;;  %s745_s3 = inlined_call_operand.hbm [shape: f32[8,128], index: 3, kind: output, shape index: {}]  }
   0x1   :  { %9 = vsyncpa [#allocation6], 0 }
   0x2   :  { %10 = vsyncpa [#allocation4], 0  ;;  %s633_s12 = smov [#allocation2]   ;;  %s634_s14 = smov [#allocation5]  }
   0x3   :  { %s17_s13 = sshll.u32 %s633_s12, 4  ;;  %s26_s15 = sshll.u32 %s634_s14, 4  ;;  %s18_s13 = int_to_ptr.vmem [resolvable:$true] %s17_s13  ;;  %s660_s15 = int_to_ptr.vmem [resolvable:$true] %s26_s15 }
   0x4   :  { %s561_s18 = scalar_lea.hbm %s742_s0, 128 }
   0x5   :  { %p562_p0 = scmp.ne.s32.totalorder %s742_s0, %s561_s18  ;;  %p565_p1 = scmp.lt.u32.totalorder %s561_s18, %s742_s0 }
   0x7   :  { %p567_p2 = pnand %p565_p1, %p562_p0 }
   0x9   :  { %570 = shalt.err (!%p567_p2)
}
   0xa   :  { %s571_s23 = scalar_lea.vmem %s18_s13, 128  ;;  %p576_p4 = scmp.lt.s32.totalorder %s18_s13, %s18_s13 }
   0xb   :  { %p572_p3 = scmp.ne.s32.totalorder %s18_s13, %s571_s23  ;;  %p577_p5 = scmp.lt.s32.totalorder %s571_s23, %s571_s23 }
   0xd   :  { %p578_p6 = por %p577_p5, %p576_p4 }
   0xf   :  { %p579_p7 = pnand %p578_p6, %p572_p3 }
  0x11   :  { %582 = shalt.err (!%p579_p7)
}
  0x12   :  { %20 = dma.hbm_to_vmem [thread:$0]  %s742_s0, 128, %s18_s13, [#allocation3]  }
  0x13   :  { %s583_s28 = scalar_lea.hbm %s743_s1, 3072 }
  0x14   :  { %p584_p8 = scmp.ne.s32.totalorder %s743_s1, %s583_s28  ;;  %p587_p9 = scmp.lt.u32.totalorder %s583_s28, %s743_s1 }
  0x16   :  { %p589_p10 = pnand %p587_p9, %p584_p8 }
  0x18   :  { %592 = shalt.err (!%p589_p10)
}
  0x19   :  { %s593_s6 = scalar_lea.vmem %s660_s15, 3072  ;;  %p598_p12 = scmp.lt.s32.totalorder %s660_s15, %s660_s15 }
  0x1a   :  { %p594_p11 = scmp.ne.s32.totalorder %s660_s15, %s593_s6  ;;  %p599_p13 = scmp.lt.s32.totalorder %s593_s6, %s593_s6 }
  0x1c   :  { %p600_p0 = por %p599_p13, %p598_p12 }
  0x1e   :  { %p601_p1 = pnand %p600_p0, %p594_p11 }
  0x20   :  { %604 = shalt.err (!%p601_p1)
}
  0x21   :  { %s635_s0 = smov 64   ;;  %s636_s7 = smov 4  }
  0x22   :  { %32 = dma.hbm_to_vmem [thread:$0]  %s743_s1, 3072, %s660_s15, [#allocation6], %s635_s0, %s635_s0, %s636_s7  }
  0x23   :  { %627 = dma.done.wait [#allocation3], 128  }
  0x24   :  { %628 = vsyncadd [#allocation3], 4294967168 }
  0x25   :  { %629 = dma.done.wait [#allocation6], 3072  }
  0x26   :  { %630 = vsyncadd [#allocation6], 4294964224  ;;  %v637_v0 = vmov 0.0   ;;  %v42_v1 = vld [vmem:[#allocation2] sm:$0xff]  ;;  %v535_v3 = vld [vmem:[#allocation5] sm:$0xff]   ;;  %vm638_vm0 = vmmov 0  }
  0x27   :  { %468 = vmatprep.subr.bf16.mxu0 %v637_v0  ;;  %488 = vmatprep.subr.bf16.mxu1 %v637_v0  ;;  %v43_v2 = vmul.f32 %v42_v1, %v42_v1  ;;  %v536_v4 = vld [vmem:[#allocation5 + $0x8] sm:$0xff]   ;;  %v537_v5 = vld [vmem:[#allocation5 + $0x10] sm:$0xff]   ;;  %v538_v6 = vld [vmem:[#allocation5 + $0x18] sm:$0xff]   ;;  %s639_s15 = smov [#allocation7]  }
  0x28   :  { %469 = vmatpush3.bf16.msra.mxu0 %v535_v3  ;;  %v539_v7 = vld [vmem:[#allocation5 + $0x20] sm:$0xff]   ;;  %v540_v8 = vld [vmem:[#allocation5 + $0x28] sm:$0xff]   ;;  %484 = vmatprep.mubr.msk.bf16.mxu0 %vm638_vm0, %v637_v0  ;;  %v541_v9 = vld [vmem:[#allocation5 + $0x30] sm:$0xff]   ;;  %s402_s16 = sshll.u32 %s639_s15, 4  ;;  %s403_s16 = int_to_ptr.vmem [resolvable:$true] %s402_s16 }
  0x29   :  { %44 = vadd.xlane.f32.xlu0 %v43_v2  ;;  %470 = vmatprep.subr.bf16.mxu0 %v637_v0  ;;  %v542_v10 = vld [vmem:[#allocation5 + $0x38] sm:$0xff]   ;;  %v543_v11 = vld [vmem:[#allocation5 + $0x40] sm:$0xff]   ;;  %v544_v12 = vld [vmem:[#allocation5 + $0x48] sm:$0xff]   ;;  %s605_s17 = scalar_lea.vmem %s403_s16, 128  ;;  %p610_p3 = scmp.lt.s32.totalorder %s403_s16, %s403_s16 }
  0x2a   :  { %504 = vmatprep.mubr.msk.bf16.mxu1 %vm638_vm0, %v637_v0  ;;  %489 = vmatpush3.bf16.msra.mxu1 %v543_v11  ;;  %v545_v13 = vld [vmem:[#allocation5 + $0x50] sm:$0xff]   ;;  %v546_v14 = vld [vmem:[#allocation5 + $0x58] sm:$0xff]   ;;  %v547_v15 = vld [vmem:[#allocation5 + $0x60] sm:$0xff]   ;;  %p606_p2 = scmp.ne.s32.totalorder %s403_s16, %s605_s17  ;;  %p611_p4 = scmp.lt.s32.totalorder %s605_s17, %s605_s17 }
  0x2b   :  { %490 = vmatprep.subr.bf16.mxu1 %v637_v0  ;;  %v548_v16 = vld [vmem:[#allocation5 + $0x68] sm:$0xff]   ;;  %v549_v22 = vld [vmem:[#allocation5 + $0x70] sm:$0xff]   ;;  %v550_v23 = vld [vmem:[#allocation5 + $0x78] sm:$0xff]  }
  0x2c   :  { %471 = vmatpush3.bf16.msra.mxu0 %v536_v4  ;;  %v551_v24 = vld [vmem:[#allocation5 + $0x80] sm:$0xff]   ;;  %v552_v25 = vld [vmem:[#allocation5 + $0x88] sm:$0xff]   ;;  %v553_v26 = vld [vmem:[#allocation5 + $0x90] sm:$0xff]   ;;  %p612_p5 = por %p611_p4, %p610_p3 }
  0x2d   :  { %472 = vmatprep.subr.bf16.mxu0 %v637_v0  ;;  %v554_v27 = vld [vmem:[#allocation5 + $0x98] sm:$0xff]   ;;  %v555_v28 = vld [vmem:[#allocation5 + $0xa0] sm:$0xff]   ;;  %v556_v29 = vld [vmem:[#allocation5 + $0xa8] sm:$0xff]  }
  0x2e   :  { %491 = vmatpush3.bf16.msra.mxu1 %v544_v12  ;;  %v412_v30 = vld [vmem:[%s744_s2] ss:$0 sm:$0xff]  ;;  %v557_v39 = vld [vmem:[#allocation5 + $0xb0] sm:$0xff]   ;;  %v422_v41 = vld [vmem:[%s744_s2 + $0x1] ss:$0 sm:$0xff]  ;;  %p613_p6 = pnand %p612_p5, %p606_p2 }
  0x2f   :  { %492 = vmatprep.subr.bf16.mxu1 %v637_v0  ;;  %v558_v40 = vld [vmem:[#allocation5 + $0xb8] sm:$0xff]  }
  0x30   :  { %473 = vmatpush3.bf16.msra.mxu0 %v537_v5  ;;  %v432_v50 = vld [vmem:[%s744_s2 + $0x2] ss:$0 sm:$0xff] }
  0x31   :  { %474 = vmatprep.subr.bf16.mxu0 %v637_v0 }
  0x32   :  { %493 = vmatpush3.bf16.msra.mxu1 %v545_v13 }
  0x33   :  { %494 = vmatprep.subr.bf16.mxu1 %v637_v0 }
  0x34   :  { %475 = vmatpush3.bf16.msra.mxu0 %v538_v6 }
  0x35   :  { %476 = vmatprep.subr.bf16.mxu0 %v637_v0 }
  0x36   :  { %495 = vmatpush3.bf16.msra.mxu1 %v546_v14 }
  0x37   :  { %496 = vmatprep.subr.bf16.mxu1 %v637_v0 }
  0x38   :  { %477 = vmatpush3.bf16.msra.mxu0 %v539_v7 }
  0x39   :  { %478 = vmatprep.subr.bf16.mxu0 %v637_v0 }
  0x3a   :  { %497 = vmatpush3.bf16.msra.mxu1 %v547_v15 }
  0x3b   :  { %498 = vmatprep.subr.bf16.mxu1 %v637_v0 }
  0x3c   :  { %479 = vmatpush3.bf16.msra.mxu0 %v540_v8 }
  0x3d   :  { %480 = vmatprep.subr.bf16.mxu0 %v637_v0 }
  0x3e   :  { %499 = vmatpush3.bf16.msra.mxu1 %v548_v16 }
  0x3f   :  { %500 = vmatprep.subr.bf16.mxu1 %v637_v0 }
  0x40   :  { %481 = vmatpush3.bf16.msra.mxu0 %v541_v9 }
  0x41   :  { %482 = vmatprep.subr.bf16.mxu0 %v637_v0 }
  0x42   :  { %501 = vmatpush3.bf16.msra.mxu1 %v549_v22 }
  0x43   :  { %502 = vmatprep.subr.bf16.mxu1 %v637_v0 }
  0x44   :  { %483 = vmatpush3.bf16.msra.mxu0 %v542_v10 }
  0x45   :  { %508 = vmatprep.subr.bf16.mxu0 %v637_v0 }
  0x46   :  { %503 = vmatpush3.bf16.msra.mxu1 %v550_v23 }
  0xb6   :  { %v45_v17 = vpop.xlane.xlu0 %44 }
  0xb7   :  { %v46_v18 = vmax.f32 %v45_v17, 1e-24 }
  0xb9   :  { %559 = vrsqrt.f32 %v46_v18 }
  0xc3   :  { %v560_v19 = vpop.eup %559 }
  0xc4   :  { %v48_v20 = vmul.f32 %v560_v19, %v42_v1 }
  0xc6   :  { %v49_v21 = vpack.c.bf16 %v48_v20, %v48_v20 }
  0xc8   :  { %485 = vmatmul.mubr.bf16.vlgmr.msra.gmra.mrb[0].mxu0 %v49_v21 }
  0xc9   :  { %524 = vmatprep.mubr.msk.bf16.mxu0 %vm638_vm0, %v637_v0  ;;  %509 = vmatpush3.bf16.msra.mxu0 %v551_v24 }
  0xca   :  { %510 = vmatprep.subr.bf16.mxu0 %v637_v0 }
  0xcd   :  { %511 = vmatpush3.bf16.msra.mxu0 %v552_v25 }
  0xce   :  { %512 = vmatprep.subr.bf16.mxu0 %v637_v0 }
  0xd1   :  { %513 = vmatpush3.bf16.msra.mxu0 %v553_v26 }
  0xd2   :  { %514 = vmatprep.subr.bf16.mxu0 %v637_v0 }
  0xd5   :  { %515 = vmatpush3.bf16.msra.mxu0 %v554_v27 }
  0xd6   :  { %516 = vmatprep.subr.bf16.mxu0 %v637_v0 }
  0xd9   :  { %517 = vmatpush3.bf16.msra.mxu0 %v555_v28 }
  0xda   :  { %518 = vmatprep.subr.bf16.mxu0 %v637_v0 }
  0xdd   :  { %519 = vmatpush3.bf16.msra.mxu0 %v556_v29 }
  0xde   :  { %520 = vmatprep.subr.bf16.mxu0 %v637_v0 }
  0xe1   :  { %521 = vmatpush3.bf16.msra.mxu0 %v557_v39 }
  0xe2   :  { %522 = vmatprep.subr.bf16.mxu0 %v637_v0 }
  0xe5   :  { %523 = vmatpush3.bf16.msra.mxu0 %v558_v40 }
 0x19b   :  { %v155_v31 = vpop.f32.mrb[0].mxu0 }
 0x19c   :  { %v156_v32 = vadd.f32 %v412_v30, %v155_v31  ;;  %v486_v33 = vpop.f32.mrb[1].mxu0 }
 0x19d   :  { %v158_v34 = vpop.f32.mrb[2].mxu0 }
 0x19e   :  { %v161_v35 = vmul.f32 0.2, %v156_v32  ;;  %v487_v36 = vpop.f32.mrb[3].mxu0 }
 0x1a0   :  { %v162_v37 = vmax.f32 %v156_v32, %v161_v35 }
 0x1a2   :  { %v163_v38 = vpack.c.bf16 %v162_v37, %v162_v37 }
 0x1a4   :  { %505 = vmatmul.mubr.bf16.vlgmr.msra.gmra.mrb[0].mxu1 %v163_v38 }
 0x277   :  { %v271_v42 = vpop.f32.mrb[0].mxu1 }
 0x278   :  { %v272_v43 = vadd.f32 %v422_v41, %v271_v42  ;;  %v506_v44 = vpop.f32.mrb[1].mxu1 }
 0x279   :  { %v274_v45 = vpop.f32.mrb[2].mxu1 }
 0x27a   :  { %v277_v46 = vmul.f32 0.2, %v272_v43  ;;  %v507_v47 = vpop.f32.mrb[3].mxu1 }
 0x27c   :  { %v278_v48 = vmax.f32 %v272_v43, %v277_v46 }
 0x27e   :  { %v279_v49 = vpack.c.bf16 %v278_v48, %v278_v48 }
 0x280   :  { %525 = vmatmul.mubr.bf16.vlgmr.msra.gmra.mrb[4].mxu0 %v279_v49 }
 0x353   :  { %v387_v51 = vpop.f32.mrb[4].mxu0 }
 0x354   :  { %v388_v52 = vadd.f32 %v432_v50, %v387_v51  ;;  %v526_v53 = vpop.f32.mrb[5].mxu0 }
 0x355   :  { %v390_v54 = vpop.f32.mrb[6].mxu0 }
 0x356   :  { %v393_v55 = vmul.f32 0.2, %v388_v52  ;;  %v527_v56 = vpop.f32.mrb[7].mxu0 }
 0x358   :  { %v394_v57 = vmax.f32 %v388_v52, %v393_v55 }
 0x35a   :  { %395 = vst [vmem:[#allocation7] sm:$0xff] %v394_v57 }
 0x35b   :  { %616 = shalt.err (!%p613_p6)
}
 0x35c   :  { %s617_s19 = scalar_lea.hbm %s745_s3, 128 }
 0x35d   :  { %p618_p7 = scmp.ne.s32.totalorder %s745_s3, %s617_s19  ;;  %p621_p8 = scmp.lt.u32.totalorder %s617_s19, %s745_s3 }
 0x35f   :  { %p623_p9 = pnand %p621_p8, %p618_p7 }
 0x361   :  { %626 = shalt.err (!%p623_p9)
}
 0x362   :  { %405 = dma.vmem_to_hbm [thread:$0]  %s403_s16, 128, %s745_s3, [#allocation4]  }
 0x363   :  { %631 = dma.done.wait [#allocation4], 128  }
 0x364   :  { %632 = vsyncadd [#allocation4], 4294967168 }
 0x365   :  { %409 = vsyncpa [#allocation3], 1 }
 0x366   :  { %410 = vsyncpa [#allocation6], 1 }
 0x367   :  { %411 = vsyncpa [#allocation4], 1 }

// kernel: tpu_custom_call.1
= control target key start
LH: loop header
LB: loop body
LE: loop exit
PB: predicated region body
PF: predicated region fallthrough
CT: control target
= control target key end

     0   :  { %8 = vsyncpa [#allocation3], 0  ;;  %s742_s0 = inlined_call_operand.hbm [shape: f32[8,128], index: 0, kind: input, shape index: {}]   ;;  %s743_s1 = inlined_call_operand.hbm [shape: bf16[3,128,128], index: 1, kind: input, shape index: {}]   ;;  %s744_s2 = inlined_call_operand.vmem [shape: f32[3,1,128], index: 2, kind: input, shape index: {}]   ;;  %s745_s3 = inlined_call_operand.hbm [shape: f32[8,128], index: 3, kind: output, shape index: {}]  }
   0x1   :  { %9 = vsyncpa [#allocation6], 0 }
   0x2   :  { %10 = vsyncpa [#allocation4], 0  ;;  %s633_s12 = smov [#allocation2]   ;;  %s634_s14 = smov [#allocation5]  }
   0x3   :  { %s17_s13 = sshll.u32 %s633_s12, 4  ;;  %s26_s15 = sshll.u32 %s634_s14, 4  ;;  %s18_s13 = int_to_ptr.vmem [resolvable:$true] %s17_s13  ;;  %s660_s15 = int_to_ptr.vmem [resolvable:$true] %s26_s15 }
   0x4   :  { %s561_s18 = scalar_lea.hbm %s742_s0, 128 }
   0x5   :  { %p562_p0 = scmp.ne.s32.totalorder %s742_s0, %s561_s18  ;;  %p565_p1 = scmp.lt.u32.totalorder %s561_s18, %s742_s0 }
   0x7   :  { %p567_p2 = pnand %p565_p1, %p562_p0 }
   0x9   :  { %570 = shalt.err (!%p567_p2)
}
   0xa   :  { %s571_s23 = scalar_lea.vmem %s18_s13, 128  ;;  %p576_p4 = scmp.lt.s32.totalorder %s18_s13, %s18_s13 }
   0xb   :  { %p572_p3 = scmp.ne.s32.totalorder %s18_s13, %s571_s23  ;;  %p577_p5 = scmp.lt.s32.totalorder %s571_s23, %s571_s23 }
   0xd   :  { %p578_p6 = por %p577_p5, %p576_p4 }
   0xf   :  { %p579_p7 = pnand %p578_p6, %p572_p3 }
  0x11   :  { %582 = shalt.err (!%p579_p7)
}
  0x12   :  { %20 = dma.hbm_to_vmem [thread:$0]  %s742_s0, 128, %s18_s13, [#allocation3]  }
  0x13   :  { %s583_s28 = scalar_lea.hbm %s743_s1, 3072 }
  0x14   :  { %p584_p8 = scmp.ne.s32.totalorder %s743_s1, %s583_s28  ;;  %p587_p9 = scmp.lt.u32.totalorder %s583_s28, %s743_s1 }
  0x16   :  { %p589_p10 = pnand %p587_p9, %p584_p8 }
  0x18   :  { %592 = shalt.err (!%p589_p10)
}
  0x19   :  { %s593_s6 = scalar_lea.vmem %s660_s15, 3072  ;;  %p598_p12 = scmp.lt.s32.totalorder %s660_s15, %s660_s15 }
  0x1a   :  { %p594_p11 = scmp.ne.s32.totalorder %s660_s15, %s593_s6  ;;  %p599_p13 = scmp.lt.s32.totalorder %s593_s6, %s593_s6 }
  0x1c   :  { %p600_p0 = por %p599_p13, %p598_p12 }
  0x1e   :  { %p601_p1 = pnand %p600_p0, %p594_p11 }
  0x20   :  { %604 = shalt.err (!%p601_p1)
}
  0x21   :  { %s635_s0 = smov 64   ;;  %s636_s7 = smov 4  }
  0x22   :  { %32 = dma.hbm_to_vmem [thread:$0]  %s743_s1, 3072, %s660_s15, [#allocation6], %s635_s0, %s635_s0, %s636_s7  }
  0x23   :  { %627 = dma.done.wait [#allocation3], 128  }
  0x24   :  { %628 = vsyncadd [#allocation3], 4294967168 }
  0x25   :  { %629 = dma.done.wait [#allocation6], 3072  }
  0x26   :  { %630 = vsyncadd [#allocation6], 4294964224  ;;  %v637_v0 = vmov 0.0   ;;  %v42_v1 = vld [vmem:[#allocation2] sm:$0xff]  ;;  %v535_v3 = vld [vmem:[#allocation5] sm:$0xff]   ;;  %vm638_vm0 = vmmov 0  }
  0x27   :  { %468 = vmatprep.subr.bf16.mxu0 %v637_v0  ;;  %488 = vmatprep.subr.bf16.mxu1 %v637_v0  ;;  %v43_v2 = vmul.f32 %v42_v1, %v42_v1  ;;  %v536_v4 = vld [vmem:[#allocation5 + $0x8] sm:$0xff]   ;;  %v537_v5 = vld [vmem:[#allocation5 + $0x10] sm:$0xff]   ;;  %v538_v6 = vld [vmem:[#allocation5 + $0x18] sm:$0xff]   ;;  %s639_s15 = smov [#allocation7]  }
  0x28   :  { %469 = vmatpush3.bf16.msra.mxu0 %v535_v3  ;;  %v539_v7 = vld [vmem:[#allocation5 + $0x20] sm:$0xff]   ;;  %v540_v8 = vld [vmem:[#allocation5 + $0x28] sm:$0xff]   ;;  %484 = vmatprep.mubr.msk.bf16.mxu0 %vm638_vm0, %v637_v0  ;;  %v541_v9 = vld [vmem:[#allocation5 + $0x30] sm:$0xff]   ;;  %s402_s16 = sshll.u32 %s639_s15, 4  ;;  %s403_s16 = int_to_ptr.vmem [resolvable:$true] %s402_s16 }
  0x29   :  { %44 = vadd.xlane.f32.xlu0 %v43_v2  ;;  %470 = vmatprep.subr.bf16.mxu0 %v637_v0  ;;  %v542_v10 = vld [vmem:[#allocation5 + $0x38] sm:$0xff]   ;;  %v543_v11 = vld [vmem:[#allocation5 + $0x40] sm:$0xff]   ;;  %v544_v12 = vld [vmem:[#allocation5 + $0x48] sm:$0xff]   ;;  %s605_s17 = scalar_lea.vmem %s403_s16, 128  ;;  %p610_p3 = scmp.lt.s32.totalorder %s403_s16, %s403_s16 }
  0x2a   :  { %504 = vmatprep.mubr.msk.bf16.mxu1 %vm638_vm0, %v637_v0  ;;  %489 = vmatpush3.bf16.msra.mxu1 %v543_v11  ;;  %v545_v13 = vld [vmem:[#allocation5 + $0x50] sm:$0xff]   ;;  %v546_v14 = vld [vmem:[#allocation5 + $0x58] sm:$0xff]   ;;  %v547_v15 = vld [vmem:[#allocation5 + $0x60] sm:$0xff]   ;;  %p606_p2 = scmp.ne.s32.totalorder %s403_s16, %s605_s17  ;;  %p611_p4 = scmp.lt.s32.totalorder %s605_s17, %s605_s17 }
  0x2b   :  { %490 = vmatprep.subr.bf16.mxu1 %v637_v0  ;;  %v548_v16 = vld [vmem:[#allocation5 + $0x68] sm:$0xff]   ;;  %v549_v22 = vld [vmem:[#allocation5 + $0x70] sm:$0xff]   ;;  %v550_v23 = vld [vmem:[#allocation5 + $0x78] sm:$0xff]  }
  0x2c   :  { %471 = vmatpush3.bf16.msra.mxu0 %v536_v4  ;;  %v551_v24 = vld [vmem:[#allocation5 + $0x80] sm:$0xff]   ;;  %v552_v25 = vld [vmem:[#allocation5 + $0x88] sm:$0xff]   ;;  %v553_v26 = vld [vmem:[#allocation5 + $0x90] sm:$0xff]   ;;  %p612_p5 = por %p611_p4, %p610_p3 }
  0x2d   :  { %472 = vmatprep.subr.bf16.mxu0 %v637_v0  ;;  %v554_v27 = vld [vmem:[#allocation5 + $0x98] sm:$0xff]   ;;  %v555_v28 = vld [vmem:[#allocation5 + $0xa0] sm:$0xff]   ;;  %v556_v29 = vld [vmem:[#allocation5 + $0xa8] sm:$0xff]  }
  0x2e   :  { %491 = vmatpush3.bf16.msra.mxu1 %v544_v12  ;;  %v412_v30 = vld [vmem:[%s744_s2] ss:$0 sm:$0xff]  ;;  %v557_v39 = vld [vmem:[#allocation5 + $0xb0] sm:$0xff]   ;;  %v422_v41 = vld [vmem:[%s744_s2 + $0x1] ss:$0 sm:$0xff]  ;;  %p613_p6 = pnand %p612_p5, %p606_p2 }
  0x2f   :  { %492 = vmatprep.subr.bf16.mxu1 %v637_v0  ;;  %v558_v40 = vld [vmem:[#allocation5 + $0xb8] sm:$0xff]  }
  0x30   :  { %473 = vmatpush3.bf16.msra.mxu0 %v537_v5  ;;  %v432_v50 = vld [vmem:[%s744_s2 + $0x2] ss:$0 sm:$0xff] }
  0x31   :  { %474 = vmatprep.subr.bf16.mxu0 %v637_v0 }
  0x32   :  { %493 = vmatpush3.bf16.msra.mxu1 %v545_v13 }
  0x33   :  { %494 = vmatprep.subr.bf16.mxu1 %v637_v0 }
  0x34   :  { %475 = vmatpush3.bf16.msra.mxu0 %v538_v6 }
  0x35   :  { %476 = vmatprep.subr.bf16.mxu0 %v637_v0 }
  0x36   :  { %495 = vmatpush3.bf16.msra.mxu1 %v546_v14 }
  0x37   :  { %496 = vmatprep.subr.bf16.mxu1 %v637_v0 }
  0x38   :  { %477 = vmatpush3.bf16.msra.mxu0 %v539_v7 }
  0x39   :  { %478 = vmatprep.subr.bf16.mxu0 %v637_v0 }
  0x3a   :  { %497 = vmatpush3.bf16.msra.mxu1 %v547_v15 }
  0x3b   :  { %498 = vmatprep.subr.bf16.mxu1 %v637_v0 }
  0x3c   :  { %479 = vmatpush3.bf16.msra.mxu0 %v540_v8 }
  0x3d   :  { %480 = vmatprep.subr.bf16.mxu0 %v637_v0 }
  0x3e   :  { %499 = vmatpush3.bf16.msra.mxu1 %v548_v16 }
  0x3f   :  { %500 = vmatprep.subr.bf16.mxu1 %v637_v0 }
  0x40   :  { %481 = vmatpush3.bf16.msra.mxu0 %v541_v9 }
  0x41   :  { %482 = vmatprep.subr.bf16.mxu0 %v637_v0 }
  0x42   :  { %501 = vmatpush3.bf16.msra.mxu1 %v549_v22 }
  0x43   :  { %502 = vmatprep.subr.bf16.mxu1 %v637_v0 }
  0x44   :  { %483 = vmatpush3.bf16.msra.mxu0 %v542_v10 }
  0x45   :  { %508 = vmatprep.subr.bf16.mxu0 %v637_v0 }
  0x46   :  { %503 = vmatpush3.bf16.msra.mxu1 %v550_v23 }
  0xb6   :  { %v45_v17 = vpop.xlane.xlu0 %44 }
  0xb7   :  { %v46_v18 = vmax.f32 %v45_v17, 1e-24 }
  0xb9   :  { %559 = vrsqrt.f32 %v46_v18 }
  0xc3   :  { %v560_v19 = vpop.eup %559 }
  0xc4   :  { %v48_v20 = vmul.f32 %v560_v19, %v42_v1 }
  0xc6   :  { %v49_v21 = vpack.c.bf16 %v48_v20, %v48_v20 }
  0xc8   :  { %485 = vmatmul.mubr.bf16.vlgmr.msra.gmra.mrb[0].mxu0 %v49_v21 }
  0xc9   :  { %524 = vmatprep.mubr.msk.bf16.mxu0 %vm638_vm0, %v637_v0  ;;  %509 = vmatpush3.bf16.msra.mxu0 %v551_v24 }
  0xca   :  { %510 = vmatprep.subr.bf16.mxu0 %v637_v0 }
  0xcd   :  { %511 = vmatpush3.bf16.msra.mxu0 %v552_v25 }
  0xce   :  { %512 = vmatprep.subr.bf16.mxu0 %v637_v0 }
  0xd1   :  { %513 = vmatpush3.bf16.msra.mxu0 %v553_v26 }
  0xd2   :  { %514 = vmatprep.subr.bf16.mxu0 %v637_v0 }
  0xd5   :  { %515 = vmatpush3.bf16.msra.mxu0 %v554_v27 }
  0xd6   :  { %516 = vmatprep.subr.bf16.mxu0 %v637_v0 }
  0xd9   :  { %517 = vmatpush3.bf16.msra.mxu0 %v555_v28 }
  0xda   :  { %518 = vmatprep.subr.bf16.mxu0 %v637_v0 }
  0xdd   :  { %519 = vmatpush3.bf16.msra.mxu0 %v556_v29 }
  0xde   :  { %520 = vmatprep.subr.bf16.mxu0 %v637_v0 }
  0xe1   :  { %521 = vmatpush3.bf16.msra.mxu0 %v557_v39 }
  0xe2   :  { %522 = vmatprep.subr.bf16.mxu0 %v637_v0 }
  0xe5   :  { %523 = vmatpush3.bf16.msra.mxu0 %v558_v40 }
 0x19b   :  { %v155_v31 = vpop.f32.mrb[0].mxu0 }
 0x19c   :  { %v156_v32 = vadd.f32 %v412_v30, %v155_v31  ;;  %v486_v33 = vpop.f32.mrb[1].mxu0 }
 0x19d   :  { %v158_v34 = vpop.f32.mrb[2].mxu0 }
 0x19e   :  { %v161_v35 = vmul.f32 0.2, %v156_v32  ;;  %v487_v36 = vpop.f32.mrb[3].mxu0 }
 0x1a0   :  { %v162_v37 = vmax.f32 %v156_v32, %v161_v35 }
 0x1a2   :  { %v163_v38 = vpack.c.bf16 %v162_v37, %v162_v37 }
 0x1a4   :  { %505 = vmatmul.mubr.bf16.vlgmr.msra.gmra.mrb[0].mxu1 %v163_v38 }
 0x277   :  { %v271_v42 = vpop.f32.mrb[0].mxu1 }
 0x278   :  { %v272_v43 = vadd.f32 %v422_v41, %v271_v42  ;;  %v506_v44 = vpop.f32.mrb[1].mxu1 }
 0x279   :  { %v274_v45 = vpop.f32.mrb[2].mxu1 }
 0x27a   :  { %v277_v46 = vmul.f32 0.2, %v272_v43  ;;  %v507_v47 = vpop.f32.mrb[3].mxu1 }
 0x27c   :  { %v278_v48 = vmax.f32 %v272_v43, %v277_v46 }
 0x27e   :  { %v279_v49 = vpack.c.bf16 %v278_v48, %v278_v48 }
 0x280   :  { %525 = vmatmul.mubr.bf16.vlgmr.msra.gmra.mrb[4].mxu0 %v279_v49 }
 0x353   :  { %v387_v51 = vpop.f32.mrb[4].mxu0 }
 0x354   :  { %v388_v52 = vadd.f32 %v432_v50, %v387_v51  ;;  %v526_v53 = vpop.f32.mrb[5].mxu0 }
 0x355   :  { %v390_v54 = vpop.f32.mrb[6].mxu0 }
 0x356   :  { %v393_v55 = vmul.f32 0.2, %v388_v52  ;;  %v527_v56 = vpop.f32.mrb[7].mxu0 }
 0x358   :  { %v394_v57 = vmax.f32 %v388_v52, %v393_v55 }
 0x35a   :  { %395 = vst [vmem:[#allocation7] sm:$0xff] %v394_v57 }
 0x35b   :  { %616 = shalt.err (!%p613_p6)
}
 0x35c   :  { %s617_s19 = scalar_lea.hbm %s745_s3, 128 }
 0x35d   :  { %p618_p7 = scmp.ne.s32.totalorder %s745_s3, %s617_s19  ;;  %p621_p8 = scmp.lt.u32.totalorder %s617_s19, %s745_s3 }
 0x35f   :  { %p623_p9 = pnand %p621_p8, %p618_p7 }
 0x361   :  { %626 = shalt.err (!%p623_p9)
}
 0x362   :  { %405 = dma.vmem_to_hbm [thread:$0]  %s403_s16, 128, %s745_s3, [#allocation4]  }
 0x363   :  { %631 = dma.done.wait [#allocation4], 128  }
 0x364   :  { %632 = vsyncadd [#allocation4], 4294967168 }
 0x365   :  { %409 = vsyncpa [#allocation3], 1 }
 0x366   :  { %410 = vsyncpa [#allocation6], 1 }
 0x367   :  { %411 = vsyncpa [#allocation4], 1 }

</bundles_post_ra>
